<compile_context>
chip_gen: v7x
topology: tpu7x:2x2x1
jax: 0.10.0
libtpu: 0.0.40
codegen_flags: <defaults>
</compile_context>

<pallas_src>
import jax
import jax.numpy as jnp
from jax.experimental import pallas as pl
from jax.experimental.pallas import tpu as pltpu


def fcn_kernel(x_ref, w1e_ref, b1_ref, w2bd_ref, b2_ref, o_ref):
    # x_ref:    (tile_g, fold)         f32   folded input rows
    # w1e_ref:  (fold, fold*d_e)       f32/bf16  kron(I_fold, w1^T)
    # b1_ref:   (1, fold*d_e)          f32   tiled fc1 bias
    # w2bd_ref: (fold*d_e, fold*d_e)   f32/bf16  kron(I_fold, W2^T) (block diagonal)
    # b2_ref:   (1, fold*d_e)          f32   tiled fc2 bias
    # o_ref:    (tile_g, fold*d_e)     out_dtype  folded, lane-dense output
    mm_dtype = w1e_ref.dtype  # f32 by default; bf16 when use_bf16_matmul=True (v5e MXU path)
    x = x_ref[...].astype(mm_dtype)
    h = jnp.dot(x, w1e_ref[...], preferred_element_type=jnp.float32) + b1_ref[...]
    h = jnp.maximum(h, 0.0)  # ReLU
    out = (
        jnp.dot(h.astype(mm_dtype), w2bd_ref[...], preferred_element_type=jnp.float32)
        + b2_ref[...]
    )
    o_ref[...] = out.astype(o_ref.dtype)


def _round_up(a, m):
    return ((a + m - 1) // m) * m


def fcn_forward(
    r_ij,
    w1,
    b1,
    w2,
    b2,
    *,
    tile_rows=32768,
    out_dtype=jnp.float32,
    use_bf16_matmul=False,
):
    """r_ij: (..., 1), any float dtype. Returns (..., d_e) in out_dtype (f32 matches FCN.forward)."""
    d_e = w1.shape[0]
    # Keep width == 128 exactly (lane-dense stores without inflating block-diagonal padding).
    fold = 128 // d_e if (d_e <= 128 and 128 % d_e == 0) else 1
    # NOTE: fold == 1 fallback (d_e > 128 or 128 % d_e != 0) is correct but loses lane density
    # (masked partial stores).
    width = fold * d_e

    lead_shape = r_ij.shape[:-1]
    x = r_ij.astype(jnp.float32).reshape(-1)  # mirrors r_ij.float(); (N,) tokens
    n = x.shape[0]

    # Folded-row count; pad tokens only to a multiple of fold (<= fold-1 extra tokens).
    nf = -(-n // fold)

    MAX_TILE_G = 8192  # 4 MiB output block; ~16.3 MiB pipeline buffers < 32 MiB scoped VMEM
    if nf < 8:
        # Tiny problem: one 8-row block (epilogue slice cost is negligible here).
        nf_rows = 8
        tile_g = 8
    else:
        nf_rows = nf  # no row padding: Pallas masks the ragged last grid block
        tile_g = max(8, min(tile_rows // fold, MAX_TILE_G))
        if nf >= 16:
            # Guarantee >= 2 grid steps so ("parallel",) shards across v7x's 2 TCs.
            tile_g = min(tile_g, _round_up(-(-nf // 2), 8))
        tile_g = min(tile_g, (nf // 8) * 8)   # keep block rows <= array rows
        tile_g = max(8, (tile_g // 8) * 8)    # sublane multiple

    total_tokens = nf_rows * fold
    if total_tokens != n:
        x = jnp.pad(x, (0, total_tokens - n))
    x_f = x.reshape(nf_rows, fold)
    num_tiles = -(-nf_rows // tile_g)

    mm_dtype = jnp.bfloat16 if use_bf16_matmul else jnp.float32
    eye = jnp.eye(fold, dtype=jnp.float32)
    w1e = jnp.kron(eye, w1.reshape(1, d_e).astype(jnp.float32)).astype(mm_dtype)  # (fold, width)
    w2bd = jnp.kron(eye, w2.T.astype(jnp.float32)).astype(mm_dtype)               # (width, width)
    b1_t = jnp.tile(b1.astype(jnp.float32), fold).reshape(1, width)
    b2_t = jnp.tile(b2.astype(jnp.float32), fold).reshape(1, width)

    out_bytes = jnp.dtype(out_dtype).itemsize
    cost = pl.CostEstimate(
        flops=2 * n * d_e * (d_e + 1),
        transcendentals=0,
        bytes_accessed=4 * n + out_bytes * n * d_e + 4 * (d_e * d_e + d_e + 2 * d_e),
    )

    out_f = pl.pallas_call(
        fcn_kernel,
        out_shape=jax.ShapeDtypeStruct((nf_rows, width), out_dtype),
        grid_spec=pltpu.PrefetchScalarGridSpec(
            num_scalar_prefetch=0,
            grid=(num_tiles,),
            in_specs=[
                pl.BlockSpec((tile_g, fold), lambda i: (i, 0)),   # folded x row tile
                pl.BlockSpec((fold, width), lambda i: (0, 0)),    # W1e (resident)
                pl.BlockSpec((1, width), lambda i: (0, 0)),       # b1 tiled
                pl.BlockSpec((width, width), lambda i: (0, 0)),   # W2 block-diag (resident)
                pl.BlockSpec((1, width), lambda i: (0, 0)),       # b2 tiled
            ],
            out_specs=pl.BlockSpec((tile_g, width), lambda i: (i, 0)),
        ),
        compiler_params=pltpu.CompilerParams(
            dimension_semantics=("parallel",),
            vmem_limit_bytes=32 * 1024 * 1024,
        ),
        cost_estimate=cost,
    )(x_f, w1e, b1_t, w2bd, b2_t)

    # Un-fold: contiguous row-major reshape (metadata only). Slice copies only on ragged shapes.
    out = out_f.reshape(nf_rows * fold, d_e)
    if total_tokens != n:
        out = out[:n]
    return out.reshape(*lead_shape, d_e)


def _ref(r_ij, w1, b1, w2, b2):
    h = jnp.maximum(r_ij.astype(jnp.float32) @ w1.T + b1, 0.0)
    return h @ w2.T + b2


if __name__ == "__main__":
    d_e = 32
    key = jax.random.PRNGKey(0)
    k_x, k_w1, k_b1, k_w2, k_b2 = jax.random.split(key, 5)

    # Deterministic synthetic parameters (PyTorch Linear shapes):
    #   fc1.weight: (d_e, 1), fc1.bias: (d_e,)
    #   fc2.weight: (d_e, d_e), fc2.bias: (d_e,)
    w1 = jax.random.normal(k_w1, (d_e, 1), dtype=jnp.float32) * 0.5
    b1 = jax.random.normal(k_b1, (d_e,), dtype=jnp.float32) * 0.1
    w2 = jax.random.normal(k_w2, (d_e, d_e), dtype=jnp.float32) * (1.0 / jnp.sqrt(d_e))
    b2 = jax.random.normal(k_b2, (d_e,), dtype=jnp.float32) * 0.1

    # Pairwise-distance-like input r_ij of shape (B, S, S, 1): N=512 tokens, fold=4 -> nf=128,
    # which exercises the forced >=2-step ("parallel") grid and the no-padding fast path.
    r_ij = jax.random.uniform(k_x, (2, 16, 16, 1), dtype=jnp.float32)
    out = jax.block_until_ready(fcn_forward(r_ij, w1, b1, w2, b2))
    ref = _ref(r_ij, w1, b1, w2, b2)
    assert out.shape == (2, 16, 16, d_e)
    assert jnp.allclose(out, ref, atol=1e-4, rtol=1e-4), float(jnp.max(jnp.abs(out - ref)))

    # Ragged shape: N = 105 (not a multiple of fold or 8) -> tiny fold pad + ragged last grid block.
    r_ij2 = jax.random.uniform(k_x, (3, 7, 5, 1), dtype=jnp.float32)
    out2 = jax.block_until_ready(fcn_forward(r_ij2, w1, b1, w2, b2))
    ref2 = _ref(r_ij2, w1, b1, w2, b2)
    assert out2.shape == (3, 7, 5, d_e)
    assert jnp.allclose(out2, ref2, atol=1e-4, rtol=1e-4), float(jnp.max(jnp.abs(out2 - ref2)))

    # Tiny shape: N = 5 -> nf < 8 single padded block path.
    r_ij3 = jax.random.uniform(k_x, (5, 1), dtype=jnp.float32)
    out3 = jax.block_until_ready(fcn_forward(r_ij3, w1, b1, w2, b2))
    ref3 = _ref(r_ij3, w1, b1, w2, b2)
    assert out3.shape == (5, d_e)
    assert jnp.allclose(out3, ref3, atol=1e-4, rtol=1e-4), float(jnp.max(jnp.abs(out3 - ref3)))

    # Opt-in bf16 MXU operand path (v5e-targeted); f32 accumulation, looser tolerance.
    out4 = jax.block_until_ready(fcn_forward(r_ij, w1, b1, w2, b2, use_bf16_matmul=True))
    assert jnp.allclose(out4, ref, atol=5e-2, rtol=5e-2), float(jnp.max(jnp.abs(out4 - ref)))

    print("KERNEL_OK")
</pallas_src>

<mosaic_0001>
module attributes {stable_mosaic.version = 11 : i64} {
  func.func @fcn_kernel(%arg0: i32, %arg1: memref<64x4xf32, #tpu.memory_space<vmem>>, %arg2: memref<4x128xf32, #tpu.memory_space<vmem>>, %arg3: memref<1x128xf32, #tpu.memory_space<vmem>>, %arg4: memref<128x128xf32, #tpu.memory_space<vmem>>, %arg5: memref<1x128xf32, #tpu.memory_space<vmem>>, %arg6: memref<64x128xf32, #tpu.memory_space<vmem>>) attributes {dimension_semantics = [#tpu.dimension_semantics<parallel>], iteration_bounds = array<i64: 2>, scalar_prefetch = 0 : i64, scratch_operands = 0 : i64, tpu.core_type = #tpu.core_type<tc>, window_params = [{transform_indices = @transform_0, window_bounds = array<i64: 64, 4>}, {pipeline_mode = #tpu.pipeline_mode<synchronous>, transform_indices = @transform_1, window_bounds = array<i64: 4, 128>}, {pipeline_mode = #tpu.pipeline_mode<synchronous>, transform_indices = @transform_2, window_bounds = array<i64: 1, 128>}, {pipeline_mode = #tpu.pipeline_mode<synchronous>, transform_indices = @transform_3, window_bounds = array<i64: 128, 128>}, {pipeline_mode = #tpu.pipeline_mode<synchronous>, transform_indices = @transform_4, window_bounds = array<i64: 1, 128>}, {transform_indices = @transform_5, window_bounds = array<i64: 64, 128>}]} {
    %c0 = arith.constant 0 : index
    %c0_0 = arith.constant 0 : index
    %0 = vector.load %arg1[%c0, %c0_0] : memref<64x4xf32, #tpu.memory_space<vmem>>, vector<64x4xf32>
    %c0_1 = arith.constant 0 : index
    %c0_2 = arith.constant 0 : index
    %1 = vector.load %arg2[%c0_1, %c0_2] : memref<4x128xf32, #tpu.memory_space<vmem>>, vector<4x128xf32>
    %cst = arith.constant dense<0.000000e+00> : vector<64x128xf32>
    %2 = tpu.matmul %0, %1, %cst {dimension_numbers = #tpu.dot_dimension_numbers<[1], [0], [0], [1], [0, 0, 1, 1], [], []>} : vector<64x4xf32>, vector<4x128xf32>, vector<64x128xf32> -> vector<64x128xf32>
    %c0_3 = arith.constant 0 : index
    %c0_4 = arith.constant 0 : index
    %3 = vector.load %arg3[%c0_3, %c0_4] : memref<1x128xf32, #tpu.memory_space<vmem>>, vector<1x128xf32>
    %4 = vector.broadcast %3 : vector<1x128xf32> to vector<64x128xf32>
    %5 = arith.addf %2, %4 : vector<64x128xf32>
    %cst_5 = arith.constant 0.000000e+00 : f32
    %6 = vector.broadcast %cst_5 : f32 to vector<64x128xf32>
    %7 = arith.maximumf %5, %6 : vector<64x128xf32>
    %c0_6 = arith.constant 0 : index
    %c0_7 = arith.constant 0 : index
    %8 = vector.load %arg4[%c0_6, %c0_7] : memref<128x128xf32, #tpu.memory_space<vmem>>, vector<128x128xf32>
    %cst_8 = arith.constant dense<0.000000e+00> : vector<64x128xf32>
    %9 = tpu.matmul %7, %8, %cst_8 {dimension_numbers = #tpu.dot_dimension_numbers<[1], [0], [0], [1], [0, 0, 1, 1], [], []>} : vector<64x128xf32>, vector<128x128xf32>, vector<64x128xf32> -> vector<64x128xf32>
    %c0_9 = arith.constant 0 : index
    %c0_10 = arith.constant 0 : index
    %10 = vector.load %arg5[%c0_9, %c0_10] : memref<1x128xf32, #tpu.memory_space<vmem>>, vector<1x128xf32>
    %11 = vector.broadcast %10 : vector<1x128xf32> to vector<64x128xf32>
    %12 = arith.addf %9, %11 : vector<64x128xf32>
    %c0_11 = arith.constant 0 : index
    %c0_12 = arith.constant 0 : index
    %13 = vector.load %arg6[%c0_11, %c0_12] : memref<64x128xf32, #tpu.memory_space<vmem>>, vector<64x128xf32>
    tpu.vector_store %arg6[%c0_11, %c0_12], %12 {strides = array<i32>} : memref<64x128xf32, #tpu.memory_space<vmem>>, vector<64x128xf32>,
    return
  }
  func.func @transform_0(%arg0: i32) -> (i32, i32) {
    %c0_i32 = arith.constant 0 : i32
    %c0_i32_0 = arith.constant 0 : i32
    return %arg0, %c0_i32 : i32, i32
  }
  func.func @transform_1(%arg0: i32) -> (i32, i32) {
    %c0_i32 = arith.constant 0 : i32
    %c0_i32_0 = arith.constant 0 : i32
    %c0_i32_1 = arith.constant 0 : i32
    return %c0_i32, %c0_i32_0 : i32, i32
  }
  func.func @transform_2(%arg0: i32) -> (i32, i32) {
    %c0_i32 = arith.constant 0 : i32
    %c0_i32_0 = arith.constant 0 : i32
    %c0_i32_1 = arith.constant 0 : i32
    return %c0_i32, %c0_i32_0 : i32, i32
  }
  func.func @transform_3(%arg0: i32) -> (i32, i32) {
    %c0_i32 = arith.constant 0 : i32
    %c0_i32_0 = arith.constant 0 : i32
    %c0_i32_1 = arith.constant 0 : i32
    return %c0_i32, %c0_i32_0 : i32, i32
  }
  func.func @transform_4(%arg0: i32) -> (i32, i32) {
    %c0_i32 = arith.constant 0 : i32
    %c0_i32_0 = arith.constant 0 : i32
    %c0_i32_1 = arith.constant 0 : i32
    return %c0_i32, %c0_i32_0 : i32, i32
  }
  func.func @transform_5(%arg0: i32) -> (i32, i32) {
    %c0_i32 = arith.constant 0 : i32
    %c0_i32_0 = arith.constant 0 : i32
    return %arg0, %c0_i32 : i32, i32
  }
}

</mosaic_0001>

<bundles_post_ra>
// kernel: tpu_custom_call.1
= control target key start
LH: loop header
LB: loop body
LE: loop exit
PB: predicated region body
PF: predicated region fallthrough
CT: control target
= control target key end

     0   :  { %10 = vsyncpa [#allocation3], 0  ;;  %s1078_s0 = inlined_call_operand.vmem [shape: f32[128,4], index: 0, kind: input, shape index: {}]   ;;  %s1079_s1 = inlined_call_operand.vmem [shape: f32[4,128], index: 1, kind: input, shape index: {}]   ;;  %s1080_s2 = inlined_call_operand.vmem [shape: f32[1,128], index: 2, kind: input, shape index: {}]   ;;  %s1081_s3 = inlined_call_operand.vmem [shape: f32[128,128], index: 3, kind: input, shape index: {}]   ;;  %s1082_s4 = inlined_call_operand.vmem [shape: f32[1,128], index: 4, kind: input, shape index: {}]   ;;  %s1083_s5 = inlined_call_operand.hbm [shape: f32[128,128], index: 5, kind: output, shape index: {}]  }
   0x1   :  { %12 = vsyncpa [#allocation3 + $0x1], 0  ;;  %s897_s18 = smov 0   ;;  %s899_s19 = smov 0  }
   0x2   :  { %s901_s20 = smov 0   ;;  %s903_s21 = smov 0  }
   0x3 LB: > { %s918_s22 = sadd.s32 4294967295, %s862_s21   ;;  %s596_s23 = sadd.s32 4294967294, %s862_s21   ;;  %s862_s21 = sphi %s903_s21, %s1089_s21   ;;  %s858_s20 = sphi %s901_s20, %s1088_s20   ;;  %s854_s19 = sphi %s899_s19, %s1087_s19   ;;  %s850_s18 = sphi %s897_s18, %s1086_s18  }
   0x4   : > { %s922_s24 = sadd.s32 1, %s862_s21   ;;  %s135_s25 = sadd.s32 1, %s858_s20 }
   0x5   : > { %s132_s26 = ssub.s32 %s862_s21, %s922_s24  ;;  %p145_p0 = scmp.ne.s32.totalorder %s858_s20, %s854_s19 }
   0x6   : > { %p133_p1 = scmp.eq.s32.totalorder %s132_s26, 0  ;;  %p146_p2 = scmp.eq.s32.totalorder %s918_s22, 1 }
   0x7   : > { %p151_p3 = scmp.ne.s32.totalorder %s854_s19, %s850_s18  ;;  %p152_p4 = scmp.eq.s32.totalorder %s596_s23, 1 }
   0x8   : > { %s933_s27 = scalar_select %p133_p1, %s858_s20, %s135_s25  }
   0x9   : > { %p935_p5 = por %p146_p2, %p145_p0  ;;  %p939_p6 = por %p152_p4, %p151_p3 }
   0xa   : > { %p599_p7 = scmp.ge.s32.totalorder %s862_s21, 1  ;;  %p191_p8 = scmp.lt.s32.totalorder %s862_s21, 3 }
   0xc   : > { %p192_p9 = pnand %p599_p7, %p191_p8 }
   0xd   : > { %v234_v0 = vld [vmem:[%s1079_s1] sm:$0xf] (!%p192_p9)  ;;  %vm267_vm0 = vcmask (!%p192_p9), 1043456   ;;  %s601_s7 = sshll.u32 (!%p192_p9), %s918_s22, 3  ;;  %v385_v2 = vld [vmem:[%s1081_s3 + $0x8] sm:$0xff] (!%p192_p9)  ;;  %v386_v3 = vld [vmem:[%s1081_s3 + $0x10] sm:$0xff] (!%p192_p9) }
   0xe   : > { %195 = sbr.rel (%p192_p9) target bundleno = 486 (0x1e6), region = 40  ;;  %v384_v1 = vld [vmem:[%s1081_s3] sm:$0xff] (!%p192_p9)  ;;  %653 = vmatprep.subr.msk.mxu0 (!%p192_p9), %vm267_vm0, %v234_v0  ;;  %p220_p10 = scmp.lt.s32.totalorder (!%p192_p9), %s601_s7, 15  ;;  %v387_v4 = vld [vmem:[%s1081_s3 + $0x18] sm:$0xff] (!%p192_p9)  ;;  %vm242_vm1 = vcmask (!%p192_p9), 31744   ;;  %v389_v8 = vld [vmem:[%s1081_s3 + $0x28] sm:$0xff] (!%p192_p9) }
   0xf   : > { %654 = vmatpush3.msk.msra.mxu0 (!%p192_p9), %vm267_vm0, %v234_v0  ;;  %v711_v5 = vpack.c.bf16 (!%p192_p9), %v385_v2, %v384_v1  ;;  %v715_v6 = vpack.c.bf16 (!%p192_p9), %v387_v4, %v386_v3  ;;  %v388_v7 = vld [vmem:[%s1081_s3 + $0x20] sm:$0xff] (!%p192_p9)  ;;  %v390_v14 = vld [vmem:[%s1081_s3 + $0x30] sm:$0xff] (!%p192_p9)  ;;  %v391_v15 = vld [vmem:[%s1081_s3 + $0x38] sm:$0xff] (!%p192_p9)  ;;  %s216_s14 = sand.u32 (!%p192_p9), 1, %s854_s19   ;;  %s619_s26 = sshll.u32 (!%p192_p9), %s918_s22, 10 }
  0x10   : > { %v719_v12 = vpack.c.bf16 (!%p192_p9), %v389_v8, %v388_v7  ;;  %v723_v17 = vpack.c.bf16 (!%p192_p9), %v391_v15, %v390_v14  ;;  %v392_v19 = vld [vmem:[%s1081_s3 + $0x40] sm:$0xff] (!%p192_p9)  ;;  %v393_v20 = vld [vmem:[%s1081_s3 + $0x48] sm:$0xff] (!%p192_p9)  ;;  %v394_v23 = vld [vmem:[%s1081_s3 + $0x50] sm:$0xff] (!%p192_p9)  ;;  %s600_s15 = sshll.u32 (!%p192_p9), %s216_s14, 6  ;;  %s1037_s22 = scalar_lea.sflag (!%p192_p9), [#allocation3], %s216_s14 }
  0x11   : > { %712 = vmatprep.subr.bf16.mxu0 (!%p192_p9), %v711_v5  ;;  %743 = vmatprep.subr.bf16.mxu1 (!%p192_p9), %v711_v5  ;;  %v727_v22 = vpack.c.bf16 (!%p192_p9), %v393_v20, %v392_v19  ;;  %v395_v24 = vld [vmem:[%s1081_s3 + $0x58] sm:$0xff] (!%p192_p9)  ;;  %v396_v27 = vld [vmem:[%s1081_s3 + $0x60] sm:$0xff] (!%p192_p9)  ;;  %v397_v28 = vld [vmem:[%s1081_s3 + $0x68] sm:$0xff] (!%p192_p9)  ;;  %s218_s23 = scalar_lea.vmem (!%p192_p9), [#allocation2], %s600_s15  ;;  %s864_s9 = smov (!%p192_p9), [#allocation2]  }
  0x12   : > { %751 = vmatpush3.bf16.msra.mxu1 (!%p192_p9), %v711_v5  ;;  %v731_v26 = vpack.c.bf16 (!%p192_p9), %v395_v24, %v394_v23  ;;  %v735_v29 = vpack.c.bf16 (!%p192_p9), %v397_v28, %v396_v27  ;;  %v398_v30 = vld [vmem:[%s1081_s3 + $0x70] sm:$0xff] (!%p192_p9)  ;;  %v399_v31 = vld [vmem:[%s1081_s3 + $0x78] sm:$0xff] (!%p192_p9)  ;;  %v603_v33 = vld [vmem:[%s1080_s2] ss:$0 sm:$0xff] (!%p192_p9)  ;;  %s534_s30 = sshll.u32 (!%p192_p9), %s218_s23, 4  ;;  %s804_s10 = sshll.u32 (!%p192_p9), %s864_s9, 4  ;;  %s1033_s30 = int_to_ptr.vmem [resolvable:$true] %s534_s30  ;;  %s805_s10 = int_to_ptr.vmem [resolvable:$false] %s804_s10 }
  0x13   : > { %744 = vmatprep.subr.bf16.mxu1 (!%p192_p9), %v715_v6  ;;  %v739_v32 = vpack.c.bf16 (!%p192_p9), %v399_v31, %v398_v30  ;;  %v613_v58 = vld [vmem:[%s1082_s4] ss:$0 sm:$0xff] (!%p192_p9)  ;;  %s806_s11 = scalar_lea.vmem (!%p192_p9), %s805_s10, 2048  ;;  %p807_p0 = scmp.lt.s32.totalorder (!%p192_p9), %s1033_s30, %s805_s10 }
  0x15   : > { %s1091_s7 = smov (!%p220_p10, %s601_s7), 15 }
  0x16   : > { %s602_s16 = sshll.u32 %s1091_s7, 3  ;;  %752 = vmatpush3.bf16.msra.mxu1 %v715_v6  ;;  %s1031_s7 = scalar_lea.hbm %s1083_s5, %s619_s26 }
  0x17   : > { %s964_s25 = scalar_lea.vmem %s1078_s0, %s602_s16  ;;  %745 = vmatprep.subr.bf16.mxu1 %v719_v12 }
  0x18   : > { %v226_v9 = vld [vmem:[%s964_s25] sm:$0xff]  ;;  %v227_v10 = vld [vmem:[%s964_s25 + $0x8] sm:$0xff]  ;;  %v228_v11 = vld [vmem:[%s964_s25 + $0x10] sm:$0xff] }
  0x19   : > { %655 = vmatprep.mubr.msk.f32.mxu0 %vm242_vm1, %v226_v9  ;;  %v229_v13 = vld [vmem:[%s964_s25 + $0x18] sm:$0xff]  ;;  %v230_v16 = vld [vmem:[%s964_s25 + $0x20] sm:$0xff]  ;;  %v231_v18 = vld [vmem:[%s964_s25 + $0x28] sm:$0xff] }
  0x1a   : > { %656 = vmatmul.mubr.msk.f32.vlgmr.msra.gmra.mrb[0].mxu0 %vm242_vm1, %v227_v10  ;;  %753 = vmatpush3.bf16.msra.mxu1 %v719_v12  ;;  %v232_v21 = vld [vmem:[%s964_s25 + $0x30] sm:$0xff]  ;;  %v233_v25 = vld [vmem:[%s964_s25 + $0x38] sm:$0xff]  ;;  %s800_s25 = scalar_lea.vmem %s1033_s30, 1024 }
  0x1b   : > { %658 = vmatprep.mubr.msk.f32.mxu0 %vm242_vm1, %v228_v11  ;;  %714 = vmatpush3.bf16.msra.mxu0 %v711_v5  ;;  %p801_p11 = scmp.ne.s32.totalorder %s1033_s30, %s800_s25  ;;  %p808_p1 = scmp.lt.s32.totalorder %s806_s11, %s800_s25 }
  0x1c   : > { %716 = vmatprep.subr.bf16.mxu0 %v715_v6  ;;  %746 = vmatprep.subr.bf16.mxu1 %v723_v17 }
  0x1d   : > { %p802_p12 = pnand %p801_p11, %p935_p5  ;;  %p809_p2 = por %p808_p1, %p807_p0 }
  0x1e   : > { %659 = vmatmul.mubr.msk.f32.gmra.mrb[2].mxu0 %vm242_vm1, %v229_v13  ;;  %754 = vmatpush3.bf16.msra.mxu1 %v723_v17 }
  0x1f   : > { %661 = vmatprep.mubr.msk.f32.mxu0 %vm242_vm1, %v230_v16  ;;  %718 = vmatpush3.bf16.msra.mxu0 %v715_v6  ;;  %p803_p13 = pneg %p802_p12 }
  0x20   : > { %720 = vmatprep.subr.bf16.mxu0 %v719_v12  ;;  %747 = vmatprep.subr.bf16.mxu1 %v727_v22 }
  0x21   : > { %p810_p3 = pnand %p809_p2, %p803_p13 }
  0x22   : > { %662 = vmatmul.mubr.msk.f32.gmra.mrb[4].mxu0 %vm242_vm1, %v231_v18  ;;  %755 = vmatpush3.bf16.msra.mxu1 %v727_v22 }
  0x23   : > { %664 = vmatprep.mubr.msk.f32.mxu0 %vm242_vm1, %v232_v21  ;;  %722 = vmatpush3.bf16.msra.mxu0 %v719_v12 }
  0x24   : > { %724 = vmatprep.subr.bf16.mxu0 %v723_v17  ;;  %748 = vmatprep.subr.bf16.mxu1 %v731_v26 }
  0x26   : > { %665 = vmatmul.mubr.msk.f32.gmra.mrb[6].mxu0 %vm242_vm1, %v233_v25  ;;  %756 = vmatpush3.bf16.msra.mxu1 %v731_v26 }
  0x27   : > { %726 = vmatpush3.bf16.msra.mxu0 %v723_v17  ;;  %749 = vmatprep.subr.bf16.mxu1 %v735_v29 }
  0x28   : > { %728 = vmatprep.subr.bf16.mxu0 %v727_v22 }
  0x2a   : > { %757 = vmatpush3.bf16.msra.mxu1 %v735_v29 }
  0x2b   : > { %730 = vmatpush3.bf16.msra.mxu0 %v727_v22  ;;  %750 = vmatprep.subr.bf16.mxu1 %v739_v32 }
  0x2c   : > { %732 = vmatprep.subr.bf16.mxu0 %v731_v26 }
  0x2e   : > { %758 = vmatpush3.bf16.msra.mxu1 %v739_v32 }
  0x2f   : > { %734 = vmatpush3.bf16.msra.mxu0 %v731_v26 }
  0x30   : > { %736 = vmatprep.subr.bf16.mxu0 %v735_v29 }
  0x33   : > { %738 = vmatpush3.bf16.msra.mxu0 %v735_v29 }
  0x34   : > { %740 = vmatprep.subr.bf16.mxu0 %v739_v32 }
  0x37   : > { %742 = vmatpush3.bf16.msra.mxu0 %v739_v32 }
  0xed   : > { %v657_v34 = vpop.f32.mrb[0].mxu0 }
  0xee   : > { %v343_v35 = vadd.f32 %v657_v34, %v603_v33  ;;  %v337_v36 = vpop.f32.mrb[1].mxu0 }
  0xef   : > { %v338_v37 = vadd.f32 %v603_v33, %v337_v36 }
  0xf0   : > { %v377_v40 = vmax.f32 %v343_v35, 0.0 }
  0xf1   : > { %v376_v38 = vmax.f32 %v338_v37, 0.0  ;;  %v660_v39 = vpop.f32.mrb[2].mxu0 }
  0xf2   : > { %v353_v41 = vadd.f32 %v660_v39, %v603_v33  ;;  %v347_v42 = vpop.f32.mrb[3].mxu0 }
  0xf3   : > { %699 = vmatprep.mubr.f32.mxu0 %v376_v38  ;;  %v348_v43 = vadd.f32 %v603_v33, %v347_v42 }
  0xf4   : > { %700 = vmatmul.mubr.f32.vlgmr.msra.gmra.mrb[8].mxu0 %v377_v40  ;;  %v379_v46 = vmax.f32 %v353_v41, 0.0 }
  0xf5   : > { %v663_v44 = vpop.f32.mrb[4].mxu0  ;;  %v378_v45 = vmax.f32 %v348_v43, 0.0 }
  0xf6   : > { %v363_v47 = vadd.f32 %v663_v44, %v603_v33  ;;  %v357_v48 = vpop.f32.mrb[5].mxu0 }
  0xf7   : > { %v358_v49 = vadd.f32 %v603_v33, %v357_v48  ;;  %702 = vmatprep.mubr.f32.mxu1 %v378_v45 }
  0xf8   : > { %703 = vmatmul.mubr.f32.vlgmr.msra.gmra.mrb[0].mxu1 %v379_v46  ;;  %v381_v52 = vmax.f32 %v363_v47, 0.0 }
  0xf9   : > { %v380_v50 = vmax.f32 %v358_v49, 0.0  ;;  %v666_v51 = vpop.f32.mrb[6].mxu0 }
  0xfa   : > { %v373_v53 = vadd.f32 %v666_v51, %v603_v33  ;;  %v367_v54 = vpop.f32.mrb[7].mxu0 }
  0xfb   : > { %v368_v55 = vadd.f32 %v603_v33, %v367_v54  ;;  %705 = vmatprep.mubr.f32.mxu1 %v380_v50 }
  0xfc   : > { %706 = vmatmul.mubr.f32.gmra.mrb[2].mxu1 %v381_v52  ;;  %v383_v57 = vmax.f32 %v373_v53, 0.0 }
  0xfd   : > { %v382_v56 = vmax.f32 %v368_v55, 0.0 }
  0xff   : > { %708 = vmatprep.mubr.f32.mxu1 %v382_v56 }
 0x100   : > { %709 = vmatmul.mubr.f32.gmra.mrb[4].mxu1 %v383_v57 }
 0x1c7   : > { %v701_v59 = vpop.f32.mrb[8].mxu0 }
 0x1c8   : > { %v479_v60 = vadd.f32 %v701_v59, %v613_v58  ;;  %v473_v61 = vpop.f32.mrb[9].mxu0 }
 0x1c9   : > { %v474_v62 = vadd.f32 %v613_v58, %v473_v61 }
 0x1ca   : > { %513 = vst [vmem:[%s218_s23 + $0x8] sm:$0xff] %v479_v60 }
 0x1cb   : > { %512 = vst [vmem:[%s218_s23] sm:$0xff] %v474_v62  ;;  %v704_v63 = vpop.f32.mrb[0].mxu1 }
 0x1cc   : > { %v489_v0 = vadd.f32 %v704_v63, %v613_v58  ;;  %v483_v1 = vpop.f32.mrb[1].mxu1 }
 0x1cd   : > { %v484_v2 = vadd.f32 %v613_v58, %v483_v1 }
 0x1ce   : > { %515 = vst [vmem:[%s218_s23 + $0x18] sm:$0xff] %v489_v0 }
 0x1cf   : > { %514 = vst [vmem:[%s218_s23 + $0x10] sm:$0xff] %v484_v2  ;;  %v707_v3 = vpop.f32.mrb[2].mxu1 }
 0x1d0   : > { %v499_v4 = vadd.f32 %v707_v3, %v613_v58  ;;  %v493_v5 = vpop.f32.mrb[3].mxu1 }
 0x1d1   : > { %v494_v6 = vadd.f32 %v613_v58, %v493_v5 }
 0x1d2   : > { %517 = vst [vmem:[%s218_s23 + $0x28] sm:$0xff] %v499_v4 }
 0x1d3   : > { %516 = vst [vmem:[%s218_s23 + $0x20] sm:$0xff] %v494_v6  ;;  %v710_v7 = vpop.f32.mrb[4].mxu1 }
 0x1d4   : > { %v509_v8 = vadd.f32 %v710_v7, %v613_v58  ;;  %v503_v9 = vpop.f32.mrb[5].mxu1 }
 0x1d5   : > { %v504_v10 = vadd.f32 %v613_v58, %v503_v9 }
 0x1d6   : > { %519 = vst [vmem:[%s218_s23 + $0x38] sm:$0xff] %v509_v8 }
 0x1d7   : > { %518 = vst [vmem:[%s218_s23 + $0x30] sm:$0xff] %v504_v10 }
 0x1d8   : > { %813 = shalt.err (!%p810_p3)
}
 0x1d9   : > { %s814_s12 = scalar_lea.hbm %s1031_s7, 1024  ;;  %s818_s15 = scalar_lea.hbm %s1083_s5, 2048 }
 0x1da   : > { %p815_p4 = scmp.ne.s32.totalorder %s1031_s7, %s814_s12  ;;  %p819_p9 = scmp.lt.u32.totalorder %s1031_s7, %s1083_s5 }
 0x1db   : > { %p820_p10 = scmp.lt.u32.totalorder %s818_s15, %s814_s12  ;;  %p822_p12 = scmp.lt.u32.totalorder %s814_s12, %s1031_s7 }
 0x1dc   : > { %p816_p7 = pnand %p815_p4, %p935_p5 }
 0x1dd   : > { %p821_p11 = por %p820_p10, %p819_p9 }
 0x1de   : > { %p817_p8 = pneg %p816_p7 }
 0x1df   : > { %p823_p13 = por %p822_p12, %p821_p11 }
 0x1e1   : > { %p824_p0 = pnand %p823_p13, %p817_p8 }
 0x1e3   : > { %827 = shalt.err (!%p824_p0)
}
 0x1e4   : > { %s865_s23 = smov 128   ;;  %s866_s26 = smov 8  }
 0x1e5   : > { %759 = dma.vmem_to_hbm [thread:$0]  (%p935_p5), %s1033_s30, 1024, %s1031_s7, %s1037_s22, %s865_s23, %s865_s23, %s866_s26  }
 0x1e6 PF: > { %p765_p1 = scmp.ge.s32.totalorder %s862_s21, 2  ;;  %s549_s6 = sand.u32 1, %s850_s18  }
 0x1e7   : > { %s550_s8 = scalar_lea.sflag [#allocation3], %s549_s6 }
 0x1e8   : > { %p762_p2 = pnand %p765_p1, %p939_p6 }
 0x1ea   : > { %845 = dma.done.wait (!%p762_p2), %s550_s8, 1024  }
 0x1eb   : > { %847 = vsyncadd (!%p762_p2), %s550_s8, 4294966272  ;;  %p15_p3 = scmp.ge.s32.totalorder %s922_s24, 4   ;;  %s1086_s18 = smov %s854_s19 }
 0x1ec   : > { %s1087_s19 = smov %s858_s20  ;;  %s1088_s20 = smov %s933_s27 }
 0x1ed   : > { %s1089_s21 = smov %s922_s24  ;;  %17 = sbr.rel (!%p15_p3) target bundleno = 3 (0x3), region = 75 }
 0x1f4   :  { %555 = vsyncpa [#allocation3], 1 }
 0x1f5   :  { %557 = vsyncpa [#allocation3 + $0x1], 1 }

</bundles_post_ra>
